<compile_context>
chip_gen: v7x
topology: tpu7x:2x2x1
jax: 0.10.0
libtpu: 0.0.40
codegen_flags: <defaults>
</compile_context>

<pallas_src>
import functools

import jax
import jax.numpy as jnp
from jax.experimental import pallas as pl
from jax.experimental.pallas import tpu as pltpu

ALPHA = 0.5
EPSILON = 0.1

_LANES = 128
_SMALL_INPUT_BYTES = 256 * 1024  # below this, plain jnp beats a kernel launch


def _sublane_multiple(dtype) -> int:
    # dtype-dependent minimum second-minor tile: f32 -> 8, bf16 -> 16, int8/fp8 -> 32.
    itemsize = jnp.dtype(dtype).itemsize
    return max(8, 32 // itemsize)


def _chip_tuning():
    """Returns (target_block_bytes, vmem_limit_bytes_or_None, multi_tc)."""
    try:
        kind = jax.devices()[0].device_kind.lower()
    except Exception:  # pragma: no cover - defensive; fall back to safe defaults
        kind = ""
    if "v7" in kind:
        # 2 TCs/chip, 64 MiB VMEM per TC, ~3.2 TB/s HBM: fat blocks + both cores.
        return 8 * 1024 * 1024, 48 << 20, True
    if "v6" in kind or "trillium" in kind:
        # 1 TC, 128 MiB VMEM: 4 MiB blocks amortize per-step overhead a bit more.
        return 4 * 1024 * 1024, 64 << 20, False
    # v5e / unknown: stay under the 16 MiB scoped-VMEM default (2 MiB blocks,
    # in+out double-buffered = ~8 MiB), no limit override needed.
    return 2 * 1024 * 1024, None, False


def _modified_tanh_kernel(x_ref, o_ref, *, alpha, epsilon):
    # Pure VPU/EUP elementwise; tanh lands in the EUP slot, the muls/add use
    # <=3 of 4 VALU slots -> binding resource is the HBM DMA, so upcasting to
    # f32 for the math (bit-stable for bf16 inputs) is free.
    x = x_ref[...].astype(jnp.float32)
    y = 0.5 * jnp.tanh(alpha * x) + epsilon
    o_ref[...] = y.astype(o_ref.dtype)


def modified_tanh(x, alpha=ALPHA, epsilon=EPSILON):
    """Applies 0.5 * tanh(alpha * x) + epsilon elementwise via a Pallas TPU kernel."""
    orig_shape = x.shape
    dtype = x.dtype
    n = x.size
    if n == 0:
        return x

    itemsize = jnp.dtype(dtype).itemsize
    alpha = float(alpha)
    epsilon = float(epsilon)

    # Small-input fast path: kernel launch + pipeline ramp dominates tiny
    # arrays; the XLA-fused elementwise op is strictly faster.
    if n * itemsize < _SMALL_INPUT_BYTES:
        y = 0.5 * jnp.tanh(alpha * x.astype(jnp.float32)) + epsilon
        return y.astype(dtype)

    sub = _sublane_multiple(dtype)
    target_block_bytes, vmem_limit, multi_tc = _chip_tuning()

    # Pick the widest lane-dense slab width that divides n exactly (wide
    # unmasked vst + fewer, fatter DMAs, zero padding). Only if n is not even
    # a multiple of 128 do we pad the (tiny, <128-element) lane tail.
    width = _LANES
    lane_ragged = (n % _LANES) != 0
    if not lane_ragged:
        for cand in (4096, 2048, 1024, 512, 256, 128):
            if n % cand == 0:
                width = cand
                break

    x_flat = jnp.ravel(x)
    if lane_ragged:
        padded_n = pl.cdiv(n, _LANES) * _LANES
        x_flat = jnp.pad(x_flat, (0, padded_n - n))
    else:
        padded_n = n
    n_rows = padded_n // width
    x2d = x_flat.reshape(n_rows, width)

    # Row tile targeting the per-generation block size, rounded to the dtype's
    # sublane multiple. Row-ragged sizes are NOT padded: Pallas masks the
    # partial last block (block_shape stays a multiple of (8, 128)).
    target_rows = max(sub, target_block_bytes // (width * itemsize))
    tile_rows = min(target_rows, n_rows)
    tile_rows = max(sub, (tile_rows // sub) * sub)
    num_blocks = pl.cdiv(n_rows, tile_rows)

    if multi_tc:
        # v7x: the single "parallel" grid axis shards across both TensorCores;
        # make sure each gets work.
        if num_blocks == 1 and n_rows > sub:
            half = pl.cdiv(n_rows, 2)
            tile_rows = max(sub, pl.cdiv(half, sub) * sub)
            num_blocks = pl.cdiv(n_rows, tile_rows)
        elif num_blocks > 1 and num_blocks % 2 == 1 and tile_rows % (2 * sub) == 0:
            tile_rows //= 2
            num_blocks = pl.cdiv(n_rows, tile_rows)

    kernel = functools.partial(_modified_tanh_kernel, alpha=alpha, epsilon=epsilon)

    cp_kwargs = dict(dimension_semantics=("parallel",))
    if vmem_limit is not None:
        cp_kwargs["vmem_limit_bytes"] = vmem_limit

    out2d = pl.pallas_call(
        kernel,
        out_shape=jax.ShapeDtypeStruct((n_rows, width), dtype),
        grid_spec=pltpu.PrefetchScalarGridSpec(
            num_scalar_prefetch=0,
            grid=(num_blocks,),
            in_specs=[pl.BlockSpec((tile_rows, width), lambda i: (i, 0))],
            out_specs=pl.BlockSpec((tile_rows, width), lambda i: (i, 0)),
        ),
        compiler_params=pltpu.CompilerParams(**cp_kwargs),
        cost_estimate=pl.CostEstimate(
            flops=3 * padded_n,
            transcendentals=padded_n,
            bytes_accessed=2 * padded_n * itemsize,
        ),
    )(x2d)

    if lane_ragged:
        # Rare path: slice the <128-element pad tail off before reshaping.
        return out2d.reshape(-1)[:n].reshape(orig_shape)
    # Fast path: contiguous reshape only, no pad/slice HBM passes.
    return out2d.reshape(orig_shape)


def _ref(x, alpha=ALPHA, epsilon=EPSILON):
    return (0.5 * jnp.tanh(alpha * x.astype(jnp.float32)) + epsilon).astype(x.dtype)


if __name__ == "__main__":
    key = jax.random.PRNGKey(0)
    k0, k1, k2, k3 = jax.random.split(key, 4)

    # 1) Small shape consistent with the PINN module (NCHW activation) ->
    #    exercises the small-input fast path.
    x_small = jax.random.normal(k0, (2, 4, 16, 16), dtype=jnp.float32)
    y_small = jax.block_until_ready(modified_tanh(x_small, ALPHA, EPSILON))
    assert y_small.shape == x_small.shape and y_small.dtype == x_small.dtype
    assert jnp.allclose(y_small, _ref(x_small), atol=1e-5, rtol=1e-5)

    # 2) Aligned Pallas path (lane-dense, no padding, no masked block).
    x_big = jax.random.normal(k1, (2, 4, 128, 128), dtype=jnp.float32)
    y_big = jax.block_until_ready(modified_tanh(x_big, ALPHA, EPSILON))
    assert y_big.shape == x_big.shape and y_big.dtype == x_big.dtype
    assert jnp.allclose(y_big, _ref(x_big), atol=1e-5, rtol=1e-5)

    # 3) Row-ragged Pallas path (partial last block masked, no pad/slice).
    x_rag = jax.random.normal(k2, (5, 3, 40, 128), dtype=jnp.float32)
    y_rag = jax.block_until_ready(modified_tanh(x_rag, ALPHA, EPSILON))
    assert y_rag.shape == x_rag.shape
    assert jnp.allclose(y_rag, _ref(x_rag), atol=1e-5, rtol=1e-5)

    # 4) Lane-ragged path (n % 128 != 0: small pad + slice tail).
    x_lr = jax.random.normal(k3, (3, 5, 67, 71), dtype=jnp.float32)
    y_lr = jax.block_until_ready(modified_tanh(x_lr, ALPHA, EPSILON))
    assert y_lr.shape == x_lr.shape
    assert jnp.allclose(y_lr, _ref(x_lr), atol=1e-5, rtol=1e-5)

    print("KERNEL_OK")
</pallas_src>

<mosaic_0001>
module attributes {stable_mosaic.version = 11 : i64} {
  func.func @_modified_tanh_kernel(%arg0: i32, %arg1: memref<32x4096xf32, #tpu.memory_space<vmem>>, %arg2: memref<32x4096xf32, #tpu.memory_space<vmem>>) attributes {dimension_semantics = [#tpu.dimension_semantics<parallel>], iteration_bounds = array<i64: 1>, scalar_prefetch = 0 : i64, scratch_operands = 0 : i64, tpu.core_type = #tpu.core_type<tc>, window_params = [{transform_indices = @transform_0, window_bounds = array<i64: 32, 4096>}, {transform_indices = @transform_1, window_bounds = array<i64: 32, 4096>}]} {
    %c0 = arith.constant 0 : index
    %c0_0 = arith.constant 0 : index
    %0 = vector.load %arg1[%c0, %c0_0] : memref<32x4096xf32, #tpu.memory_space<vmem>>, vector<32x4096xf32>
    %cst = arith.constant 5.000000e-01 : f32
    %1 = vector.broadcast %cst : f32 to vector<32x4096xf32>
    %2 = arith.mulf %1, %0 : vector<32x4096xf32>
    %3 = math.tanh %2 : vector<32x4096xf32>
    %cst_1 = arith.constant 5.000000e-01 : f32
    %4 = vector.broadcast %cst_1 : f32 to vector<32x4096xf32>
    %5 = arith.mulf %4, %3 : vector<32x4096xf32>
    %cst_2 = arith.constant 1.000000e-01 : f32
    %6 = vector.broadcast %cst_2 : f32 to vector<32x4096xf32>
    %7 = arith.addf %5, %6 : vector<32x4096xf32>
    %c0_3 = arith.constant 0 : index
    %c0_4 = arith.constant 0 : index
    %8 = vector.load %arg2[%c0_3, %c0_4] : memref<32x4096xf32, #tpu.memory_space<vmem>>, vector<32x4096xf32>
    tpu.vector_store %arg2[%c0_3, %c0_4], %7 {strides = array<i32>} : memref<32x4096xf32, #tpu.memory_space<vmem>>, vector<32x4096xf32>,
    return
  }
  func.func @transform_0(%arg0: i32) -> (i32, i32) {
    %c0_i32 = arith.constant 0 : i32
    %c0_i32_0 = arith.constant 0 : i32
    return %arg0, %c0_i32 : i32, i32
  }
  func.func @transform_1(%arg0: i32) -> (i32, i32) {
    %c0_i32 = arith.constant 0 : i32
    %c0_i32_0 = arith.constant 0 : i32
    return %arg0, %c0_i32 : i32, i32
  }
}

</mosaic_0001>

<bundles_post_ra>
// kernel: tpu_custom_call.1
= control target key start
LH: loop header
LB: loop body
LE: loop exit
PB: predicated region body
PF: predicated region fallthrough
CT: control target
= control target key end

     0   :  { %6 = vsyncpa [#allocation3], 0  ;;  %s1160_s0 = inlined_call_operand.hbm [shape: f32[32,4096], index: 0, kind: input, shape index: {}]   ;;  %s1161_s1 = inlined_call_operand.hbm [shape: f32[32,4096], index: 1, kind: output, shape index: {}]  }
   0x1   :  { %7 = vsyncpa [#allocation4], 0  ;;  %s1116_s6 = smov [#allocation2]   ;;  %s1068_s10 = scalar_lea.hbm %s1160_s0, 16384 }
   0x2   :  { %s13_s7 = sshll.u32 %s1116_s6, 4  ;;  %p1069_p0 = scmp.ne.s32.totalorder %s1160_s0, %s1068_s10  ;;  %s14_s7 = int_to_ptr.vmem [resolvable:$true] %s13_s7 }
   0x3   :  { %p1072_p1 = scmp.lt.u32.totalorder %s1068_s10, %s1160_s0 }
   0x5   :  { %p1074_p2 = pnand %p1072_p1, %p1069_p0 }
   0x7   :  { %1077 = shalt.err (!%p1074_p2)
}
   0x8   :  { %s1078_s15 = scalar_lea.vmem %s14_s7, 16384  ;;  %p1083_p4 = scmp.lt.s32.totalorder %s14_s7, %s14_s7 }
   0x9   :  { %p1079_p3 = scmp.ne.s32.totalorder %s14_s7, %s1078_s15  ;;  %p1084_p5 = scmp.lt.s32.totalorder %s1078_s15, %s1078_s15 }
   0xb   :  { %p1085_p6 = por %p1084_p5, %p1083_p4 }
   0xd   :  { %p1086_p7 = pnand %p1085_p6, %p1079_p3 }
   0xf   :  { %1089 = shalt.err (!%p1086_p7)
}
  0x10   :  { %s1117_s16 = smov 4096   ;;  %s1118_s17 = smov 256  }
  0x11   :  { %19 = dma.hbm_to_vmem [thread:$0]  %s1160_s0, 16384, %s14_s7, [#allocation3], %s1117_s16, %s1117_s16, %s1118_s17  }
  0x12   :  { %1112 = dma.done.wait [#allocation3], 16384  }
  0x13   :  { %1113 = vsyncadd [#allocation3], 4294950912  ;;  %v23_v0 = vld [vmem:[#allocation2] sm:$0xff]  ;;  %v24_v1 = vld [vmem:[#allocation2 + $0x8] sm:$0xff]  ;;  %s1119_s0 = smov [#allocation5]  }
  0x14   :  { %v25_v2 = vld [vmem:[#allocation2 + $0x10] sm:$0xff]  ;;  %v151_v3 = vmul.f32 0.5, %v23_v0  ;;  %v152_v4 = vmul.f32 0.5, %v24_v1  ;;  %v26_v6 = vld [vmem:[#allocation2 + $0x18] sm:$0xff]  ;;  %v27_v7 = vld [vmem:[#allocation2 + $0x20] sm:$0xff]  ;;  %s796_s20 = sshll.u32 %s1119_s0, 4  ;;  %s797_s20 = int_to_ptr.vmem [resolvable:$true] %s796_s20 }
  0x15   :  { %v153_v5 = vmul.f32 0.5, %v25_v2  ;;  %v28_v8 = vld [vmem:[#allocation2 + $0x28] sm:$0xff]  ;;  %v154_v9 = vmul.f32 0.5, %v26_v6  ;;  %v29_v10 = vld [vmem:[#allocation2 + $0x30] sm:$0xff]  ;;  %v155_v11 = vmul.f32 0.5, %v27_v7  ;;  %v30_v12 = vld [vmem:[#allocation2 + $0x38] sm:$0xff]  ;;  %p1095_p9 = scmp.lt.s32.totalorder %s797_s20, %s797_s20 }
  0x16   :  { %812 = vtanh.f32 %v151_v3  ;;  %v156_v13 = vmul.f32 0.5, %v28_v8  ;;  %v31_v14 = vld [vmem:[#allocation2 + $0x40] sm:$0xff]  ;;  %v157_v15 = vmul.f32 0.5, %v29_v10  ;;  %v32_v16 = vld [vmem:[#allocation2 + $0x48] sm:$0xff]  ;;  %v158_v17 = vmul.f32 0.5, %v30_v12  ;;  %v33_v18 = vld [vmem:[#allocation2 + $0x50] sm:$0xff] }
  0x17   :  { %814 = vtanh.f32 %v152_v4  ;;  %v159_v19 = vmul.f32 0.5, %v31_v14  ;;  %v34_v20 = vld [vmem:[#allocation2 + $0x58] sm:$0xff]  ;;  %v160_v21 = vmul.f32 0.5, %v32_v16  ;;  %v35_v22 = vld [vmem:[#allocation2 + $0x60] sm:$0xff]  ;;  %v161_v23 = vmul.f32 0.5, %v33_v18  ;;  %v36_v24 = vld [vmem:[#allocation2 + $0x68] sm:$0xff] }
  0x18   :  { %816 = vtanh.f32 %v153_v5  ;;  %v162_v25 = vmul.f32 0.5, %v34_v20  ;;  %v37_v26 = vld [vmem:[#allocation2 + $0x70] sm:$0xff]  ;;  %v163_v27 = vmul.f32 0.5, %v35_v22  ;;  %v38_v28 = vld [vmem:[#allocation2 + $0x78] sm:$0xff]  ;;  %v164_v29 = vmul.f32 0.5, %v36_v24  ;;  %v39_v30 = vld [vmem:[#allocation2 + $0x80] sm:$0xff] }
  0x19   :  { %818 = vtanh.f32 %v154_v9  ;;  %v165_v32 = vmul.f32 0.5, %v37_v26  ;;  %v40_v33 = vld [vmem:[#allocation2 + $0x88] sm:$0xff]  ;;  %v166_v36 = vmul.f32 0.5, %v38_v28  ;;  %v41_v37 = vld [vmem:[#allocation2 + $0x90] sm:$0xff]  ;;  %v167_v40 = vmul.f32 0.5, %v39_v30  ;;  %v42_v41 = vld [vmem:[#allocation2 + $0x98] sm:$0xff] }
  0x1a   :  { %820 = vtanh.f32 %v155_v11  ;;  %v168_v45 = vmul.f32 0.5, %v40_v33  ;;  %v43_v46 = vld [vmem:[#allocation2 + $0xa0] sm:$0xff]  ;;  %v169_v50 = vmul.f32 0.5, %v41_v37  ;;  %v44_v51 = vld [vmem:[#allocation2 + $0xa8] sm:$0xff]  ;;  %v170_v55 = vmul.f32 0.5, %v42_v41  ;;  %v45_v56 = vld [vmem:[#allocation2 + $0xb0] sm:$0xff] }
  0x1b   :  { %822 = vtanh.f32 %v156_v13  ;;  %v171_v60 = vmul.f32 0.5, %v43_v46  ;;  %v46_v61 = vld [vmem:[#allocation2 + $0xb8] sm:$0xff]  ;;  %v172_v1 = vmul.f32 0.5, %v44_v51  ;;  %v47_v2 = vld [vmem:[#allocation2 + $0xc0] sm:$0xff]  ;;  %v173_v6 = vmul.f32 0.5, %v45_v56  ;;  %v48_v7 = vld [vmem:[#allocation2 + $0xc8] sm:$0xff] }
  0x1c   :  { %824 = vtanh.f32 %v157_v15  ;;  %v174_v11 = vmul.f32 0.5, %v46_v61  ;;  %v49_v12 = vld [vmem:[#allocation2 + $0xd0] sm:$0xff]  ;;  %v175_v16 = vmul.f32 0.5, %v47_v2  ;;  %v51_v22 = vld [vmem:[#allocation2 + $0xe0] sm:$0xff]  ;;  %v54_v37 = vld [vmem:[#allocation2 + $0xf8] sm:$0xff]  ;;  %s1090_s21 = scalar_lea.vmem %s797_s20, 16384 }
  0x1d   :  { %826 = vtanh.f32 %v158_v17  ;;  %v50_v17 = vld [vmem:[#allocation2 + $0xd8] sm:$0xff]  ;;  %v177_v26 = vmul.f32 0.5, %v49_v12  ;;  %v182_v51 = vmul.f32 0.5, %v54_v37  ;;  %p1091_p8 = scmp.ne.s32.totalorder %s797_s20, %s1090_s21  ;;  %p1096_p10 = scmp.lt.s32.totalorder %s1090_s21, %s1090_s21 }
  0x1e   :  { %828 = vtanh.f32 %v159_v19 }
  0x1f   :  { %830 = vtanh.f32 %v160_v21  ;;  %v176_v21 = vmul.f32 0.5, %v48_v7  ;;  %p1097_p11 = por %p1096_p10, %p1095_p9 }
  0x20   :  { %v813_v31 = vpop.eup %812  ;;  %832 = vtanh.f32 %v161_v23 }
  0x21   :  { %v815_v34 = vpop.eup %814  ;;  %v407_v35 = vmul.f32 0.5, %v813_v31  ;;  %834 = vtanh.f32 %v162_v25  ;;  %v178_v31 = vmul.f32 0.5, %v50_v17  ;;  %p1098_p12 = pnand %p1097_p11, %p1091_p8 }
  0x22   :  { %v817_v38 = vpop.eup %816  ;;  %v408_v39 = vmul.f32 0.5, %v815_v34  ;;  %836 = vtanh.f32 %v163_v27  ;;  %v52_v27 = vld [vmem:[#allocation2 + $0xe8] sm:$0xff] }
  0x23   :  { %v819_v42 = vpop.eup %818  ;;  %v535_v43 = vadd.f32 0.1, %v407_v35  ;;  %v409_v44 = vmul.f32 0.5, %v817_v38  ;;  %838 = vtanh.f32 %v164_v29  ;;  %v180_v41 = vmul.f32 0.5, %v52_v27 }
  0x24   :  { %v821_v47 = vpop.eup %820  ;;  %v536_v48 = vadd.f32 0.1, %v408_v39  ;;  %v410_v49 = vmul.f32 0.5, %v819_v42  ;;  %840 = vtanh.f32 %v165_v32  ;;  %v53_v32 = vld [vmem:[#allocation2 + $0xf0] sm:$0xff]  ;;  %v55_v42 = vld [vmem:[#allocation2 + $0x100] sm:$0xff] }
  0x25   :  { %v823_v52 = vpop.eup %822  ;;  %663 = vst [vmem:[#allocation5] sm:$0xff] %v535_v43  ;;  %v537_v53 = vadd.f32 0.1, %v409_v44  ;;  %v411_v54 = vmul.f32 0.5, %v821_v47  ;;  %842 = vtanh.f32 %v166_v36  ;;  %v179_v36 = vmul.f32 0.5, %v51_v22  ;;  %v56_v47 = vld [vmem:[#allocation2 + $0x108] sm:$0xff] }
  0x26   :  { %v825_v57 = vpop.eup %824  ;;  %664 = vst [vmem:[#allocation5 + $0x8] sm:$0xff] %v536_v48  ;;  %v538_v58 = vadd.f32 0.1, %v410_v49  ;;  %v412_v59 = vmul.f32 0.5, %v823_v52  ;;  %844 = vtanh.f32 %v167_v40  ;;  %v181_v46 = vmul.f32 0.5, %v53_v32  ;;  %v57_v52 = vld [vmem:[#allocation2 + $0x110] sm:$0xff] }
  0x27   :  { %v827_v62 = vpop.eup %826  ;;  %665 = vst [vmem:[#allocation5 + $0x10] sm:$0xff] %v537_v53  ;;  %v539_v63 = vadd.f32 0.1, %v411_v54  ;;  %v413_v0 = vmul.f32 0.5, %v825_v57  ;;  %846 = vtanh.f32 %v168_v45  ;;  %v183_v56 = vmul.f32 0.5, %v55_v42  ;;  %v58_v57 = vld [vmem:[#allocation2 + $0x118] sm:$0xff] }
  0x28   :  { %v829_v3 = vpop.eup %828  ;;  %666 = vst [vmem:[#allocation5 + $0x18] sm:$0xff] %v538_v58  ;;  %v540_v4 = vadd.f32 0.1, %v412_v59  ;;  %v414_v5 = vmul.f32 0.5, %v827_v62  ;;  %848 = vtanh.f32 %v169_v50  ;;  %v184_v61 = vmul.f32 0.5, %v56_v47  ;;  %v59_v62 = vld [vmem:[#allocation2 + $0x120] sm:$0xff] }
  0x29   :  { %v831_v8 = vpop.eup %830  ;;  %667 = vst [vmem:[#allocation5 + $0x20] sm:$0xff] %v539_v63  ;;  %v541_v9 = vadd.f32 0.1, %v413_v0  ;;  %v415_v10 = vmul.f32 0.5, %v829_v3  ;;  %850 = vtanh.f32 %v170_v55  ;;  %v185_v2 = vmul.f32 0.5, %v57_v52  ;;  %v60_v3 = vld [vmem:[#allocation2 + $0x128] sm:$0xff] }
  0x2a   :  { %v833_v13 = vpop.eup %832  ;;  %668 = vst [vmem:[#allocation5 + $0x28] sm:$0xff] %v540_v4  ;;  %v542_v14 = vadd.f32 0.1, %v414_v5  ;;  %v416_v15 = vmul.f32 0.5, %v831_v8  ;;  %852 = vtanh.f32 %v171_v60  ;;  %v186_v7 = vmul.f32 0.5, %v58_v57  ;;  %v61_v8 = vld [vmem:[#allocation2 + $0x130] sm:$0xff] }
  0x2b   :  { %v835_v18 = vpop.eup %834  ;;  %669 = vst [vmem:[#allocation5 + $0x30] sm:$0xff] %v541_v9  ;;  %v543_v19 = vadd.f32 0.1, %v415_v10  ;;  %v417_v20 = vmul.f32 0.5, %v833_v13  ;;  %854 = vtanh.f32 %v172_v1  ;;  %v187_v12 = vmul.f32 0.5, %v59_v62  ;;  %v62_v13 = vld [vmem:[#allocation2 + $0x138] sm:$0xff] }
  0x2c   :  { %v837_v23 = vpop.eup %836  ;;  %670 = vst [vmem:[#allocation5 + $0x38] sm:$0xff] %v542_v14  ;;  %v544_v24 = vadd.f32 0.1, %v416_v15  ;;  %v418_v25 = vmul.f32 0.5, %v835_v18  ;;  %856 = vtanh.f32 %v173_v6  ;;  %v188_v17 = vmul.f32 0.5, %v60_v3  ;;  %v63_v18 = vld [vmem:[#allocation2 + $0x140] sm:$0xff] }
  0x2d   :  { %v839_v28 = vpop.eup %838  ;;  %671 = vst [vmem:[#allocation5 + $0x40] sm:$0xff] %v543_v19  ;;  %v545_v29 = vadd.f32 0.1, %v417_v20  ;;  %v419_v30 = vmul.f32 0.5, %v837_v23  ;;  %858 = vtanh.f32 %v174_v11  ;;  %v189_v22 = vmul.f32 0.5, %v61_v8  ;;  %v64_v23 = vld [vmem:[#allocation2 + $0x148] sm:$0xff] }
  0x2e   :  { %v841_v33 = vpop.eup %840  ;;  %672 = vst [vmem:[#allocation5 + $0x48] sm:$0xff] %v544_v24  ;;  %v546_v34 = vadd.f32 0.1, %v418_v25  ;;  %v420_v35 = vmul.f32 0.5, %v839_v28  ;;  %860 = vtanh.f32 %v175_v16  ;;  %v190_v27 = vmul.f32 0.5, %v62_v13  ;;  %v65_v28 = vld [vmem:[#allocation2 + $0x150] sm:$0xff] }
  0x2f   :  { %v843_v38 = vpop.eup %842  ;;  %673 = vst [vmem:[#allocation5 + $0x50] sm:$0xff] %v545_v29  ;;  %v547_v39 = vadd.f32 0.1, %v419_v30  ;;  %v421_v40 = vmul.f32 0.5, %v841_v33  ;;  %862 = vtanh.f32 %v176_v21  ;;  %v191_v32 = vmul.f32 0.5, %v63_v18  ;;  %v66_v33 = vld [vmem:[#allocation2 + $0x158] sm:$0xff] }
  0x30   :  { %v845_v43 = vpop.eup %844  ;;  %674 = vst [vmem:[#allocation5 + $0x58] sm:$0xff] %v546_v34  ;;  %v548_v44 = vadd.f32 0.1, %v420_v35  ;;  %v422_v45 = vmul.f32 0.5, %v843_v38  ;;  %864 = vtanh.f32 %v177_v26  ;;  %v192_v37 = vmul.f32 0.5, %v64_v23  ;;  %v67_v38 = vld [vmem:[#allocation2 + $0x160] sm:$0xff] }
  0x31   :  { %v847_v48 = vpop.eup %846  ;;  %675 = vst [vmem:[#allocation5 + $0x60] sm:$0xff] %v547_v39  ;;  %v549_v49 = vadd.f32 0.1, %v421_v40  ;;  %v423_v50 = vmul.f32 0.5, %v845_v43  ;;  %866 = vtanh.f32 %v178_v31  ;;  %v193_v42 = vmul.f32 0.5, %v65_v28  ;;  %v68_v43 = vld [vmem:[#allocation2 + $0x168] sm:$0xff] }
  0x32   :  { %v849_v53 = vpop.eup %848  ;;  %676 = vst [vmem:[#allocation5 + $0x68] sm:$0xff] %v548_v44  ;;  %v550_v54 = vadd.f32 0.1, %v422_v45  ;;  %v424_v55 = vmul.f32 0.5, %v847_v48  ;;  %868 = vtanh.f32 %v179_v36  ;;  %v194_v47 = vmul.f32 0.5, %v66_v33  ;;  %v69_v48 = vld [vmem:[#allocation2 + $0x170] sm:$0xff] }
  0x33   :  { %v851_v58 = vpop.eup %850  ;;  %677 = vst [vmem:[#allocation5 + $0x70] sm:$0xff] %v549_v49  ;;  %v551_v59 = vadd.f32 0.1, %v423_v50  ;;  %v425_v60 = vmul.f32 0.5, %v849_v53  ;;  %870 = vtanh.f32 %v180_v41  ;;  %v195_v52 = vmul.f32 0.5, %v67_v38  ;;  %v70_v53 = vld [vmem:[#allocation2 + $0x178] sm:$0xff] }
  0x34   :  { %v853_v63 = vpop.eup %852  ;;  %678 = vst [vmem:[#allocation5 + $0x78] sm:$0xff] %v550_v54  ;;  %v552_v0 = vadd.f32 0.1, %v424_v55  ;;  %v426_v1 = vmul.f32 0.5, %v851_v58  ;;  %872 = vtanh.f32 %v181_v46  ;;  %v196_v57 = vmul.f32 0.5, %v68_v43  ;;  %v71_v58 = vld [vmem:[#allocation2 + $0x180] sm:$0xff] }
  0x35   :  { %v855_v4 = vpop.eup %854  ;;  %679 = vst [vmem:[#allocation5 + $0x80] sm:$0xff] %v551_v59  ;;  %v553_v5 = vadd.f32 0.1, %v425_v60  ;;  %v427_v6 = vmul.f32 0.5, %v853_v63  ;;  %874 = vtanh.f32 %v182_v51  ;;  %v197_v62 = vmul.f32 0.5, %v69_v48  ;;  %v72_v63 = vld [vmem:[#allocation2 + $0x188] sm:$0xff] }
  0x36   :  { %v857_v9 = vpop.eup %856  ;;  %680 = vst [vmem:[#allocation5 + $0x88] sm:$0xff] %v552_v0  ;;  %v554_v10 = vadd.f32 0.1, %v426_v1  ;;  %v428_v11 = vmul.f32 0.5, %v855_v4  ;;  %876 = vtanh.f32 %v183_v56  ;;  %v198_v3 = vmul.f32 0.5, %v70_v53  ;;  %v73_v4 = vld [vmem:[#allocation2 + $0x190] sm:$0xff] }
  0x37   :  { %v859_v14 = vpop.eup %858  ;;  %681 = vst [vmem:[#allocation5 + $0x90] sm:$0xff] %v553_v5  ;;  %v555_v15 = vadd.f32 0.1, %v427_v6  ;;  %v429_v16 = vmul.f32 0.5, %v857_v9  ;;  %878 = vtanh.f32 %v184_v61  ;;  %v199_v8 = vmul.f32 0.5, %v71_v58  ;;  %v74_v9 = vld [vmem:[#allocation2 + $0x198] sm:$0xff] }
  0x38   :  { %v861_v19 = vpop.eup %860  ;;  %682 = vst [vmem:[#allocation5 + $0x98] sm:$0xff] %v554_v10  ;;  %v556_v20 = vadd.f32 0.1, %v428_v11  ;;  %v430_v21 = vmul.f32 0.5, %v859_v14  ;;  %880 = vtanh.f32 %v185_v2  ;;  %v200_v13 = vmul.f32 0.5, %v72_v63  ;;  %v75_v14 = vld [vmem:[#allocation2 + $0x1a0] sm:$0xff] }
  0x39   :  { %v863_v24 = vpop.eup %862  ;;  %683 = vst [vmem:[#allocation5 + $0xa0] sm:$0xff] %v555_v15  ;;  %v557_v25 = vadd.f32 0.1, %v429_v16  ;;  %v431_v26 = vmul.f32 0.5, %v861_v19  ;;  %882 = vtanh.f32 %v186_v7  ;;  %v201_v18 = vmul.f32 0.5, %v73_v4  ;;  %v76_v19 = vld [vmem:[#allocation2 + $0x1a8] sm:$0xff] }
  0x3a   :  { %v865_v29 = vpop.eup %864  ;;  %684 = vst [vmem:[#allocation5 + $0xa8] sm:$0xff] %v556_v20  ;;  %v558_v30 = vadd.f32 0.1, %v430_v21  ;;  %v432_v31 = vmul.f32 0.5, %v863_v24  ;;  %884 = vtanh.f32 %v187_v12  ;;  %v202_v23 = vmul.f32 0.5, %v74_v9  ;;  %v77_v24 = vld [vmem:[#allocation2 + $0x1b0] sm:$0xff] }
  0x3b   :  { %v867_v34 = vpop.eup %866  ;;  %685 = vst [vmem:[#allocation5 + $0xb0] sm:$0xff] %v557_v25  ;;  %v559_v35 = vadd.f32 0.1, %v431_v26  ;;  %v433_v36 = vmul.f32 0.5, %v865_v29  ;;  %886 = vtanh.f32 %v188_v17  ;;  %v203_v28 = vmul.f32 0.5, %v75_v14  ;;  %v78_v29 = vld [vmem:[#allocation2 + $0x1b8] sm:$0xff] }
  0x3c   :  { %v869_v39 = vpop.eup %868  ;;  %686 = vst [vmem:[#allocation5 + $0xb8] sm:$0xff] %v558_v30  ;;  %v560_v40 = vadd.f32 0.1, %v432_v31  ;;  %v434_v41 = vmul.f32 0.5, %v867_v34  ;;  %888 = vtanh.f32 %v189_v22  ;;  %v204_v33 = vmul.f32 0.5, %v76_v19  ;;  %v79_v34 = vld [vmem:[#allocation2 + $0x1c0] sm:$0xff] }
  0x3d   :  { %v871_v44 = vpop.eup %870  ;;  %687 = vst [vmem:[#allocation5 + $0xc0] sm:$0xff] %v559_v35  ;;  %v561_v45 = vadd.f32 0.1, %v433_v36  ;;  %v435_v46 = vmul.f32 0.5, %v869_v39  ;;  %890 = vtanh.f32 %v190_v27  ;;  %v205_v38 = vmul.f32 0.5, %v77_v24  ;;  %v80_v39 = vld [vmem:[#allocation2 + $0x1c8] sm:$0xff] }
  0x3e   :  { %v873_v49 = vpop.eup %872  ;;  %688 = vst [vmem:[#allocation5 + $0xc8] sm:$0xff] %v560_v40  ;;  %v562_v50 = vadd.f32 0.1, %v434_v41  ;;  %v436_v51 = vmul.f32 0.5, %v871_v44  ;;  %892 = vtanh.f32 %v191_v32  ;;  %v206_v43 = vmul.f32 0.5, %v78_v29  ;;  %v81_v44 = vld [vmem:[#allocation2 + $0x1d0] sm:$0xff] }
  0x3f   :  { %v875_v54 = vpop.eup %874  ;;  %689 = vst [vmem:[#allocation5 + $0xd0] sm:$0xff] %v561_v45  ;;  %v563_v55 = vadd.f32 0.1, %v435_v46  ;;  %v437_v56 = vmul.f32 0.5, %v873_v49  ;;  %894 = vtanh.f32 %v192_v37  ;;  %v207_v48 = vmul.f32 0.5, %v79_v34  ;;  %v82_v49 = vld [vmem:[#allocation2 + $0x1d8] sm:$0xff] }
  0x40   :  { %v877_v59 = vpop.eup %876  ;;  %690 = vst [vmem:[#allocation5 + $0xd8] sm:$0xff] %v562_v50  ;;  %v564_v60 = vadd.f32 0.1, %v436_v51  ;;  %v438_v61 = vmul.f32 0.5, %v875_v54  ;;  %896 = vtanh.f32 %v193_v42  ;;  %v208_v53 = vmul.f32 0.5, %v80_v39  ;;  %v83_v54 = vld [vmem:[#allocation2 + $0x1e0] sm:$0xff] }
  0x41   :  { %v879_v0 = vpop.eup %878  ;;  %691 = vst [vmem:[#allocation5 + $0xe0] sm:$0xff] %v563_v55  ;;  %v565_v1 = vadd.f32 0.1, %v437_v56  ;;  %v439_v2 = vmul.f32 0.5, %v877_v59  ;;  %898 = vtanh.f32 %v194_v47  ;;  %v209_v58 = vmul.f32 0.5, %v81_v44  ;;  %v84_v59 = vld [vmem:[#allocation2 + $0x1e8] sm:$0xff] }
  0x42   :  { %v881_v5 = vpop.eup %880  ;;  %692 = vst [vmem:[#allocation5 + $0xe8] sm:$0xff] %v564_v60  ;;  %v566_v6 = vadd.f32 0.1, %v438_v61  ;;  %v440_v7 = vmul.f32 0.5, %v879_v0  ;;  %900 = vtanh.f32 %v195_v52  ;;  %v210_v63 = vmul.f32 0.5, %v82_v49  ;;  %v85_v0 = vld [vmem:[#allocation2 + $0x1f0] sm:$0xff] }
  0x43   :  { %v883_v10 = vpop.eup %882  ;;  %693 = vst [vmem:[#allocation5 + $0xf0] sm:$0xff] %v565_v1  ;;  %v567_v11 = vadd.f32 0.1, %v439_v2  ;;  %v441_v12 = vmul.f32 0.5, %v881_v5  ;;  %902 = vtanh.f32 %v196_v57  ;;  %v211_v4 = vmul.f32 0.5, %v83_v54  ;;  %v86_v5 = vld [vmem:[#allocation2 + $0x1f8] sm:$0xff] }
  0x44   :  { %v885_v15 = vpop.eup %884  ;;  %694 = vst [vmem:[#allocation5 + $0xf8] sm:$0xff] %v566_v6  ;;  %v568_v16 = vadd.f32 0.1, %v440_v7  ;;  %v442_v17 = vmul.f32 0.5, %v883_v10  ;;  %904 = vtanh.f32 %v197_v62  ;;  %v212_v9 = vmul.f32 0.5, %v84_v59  ;;  %v87_v10 = vld [vmem:[#allocation2 + $0x200] sm:$0xff] }
  0x45   :  { %v887_v20 = vpop.eup %886  ;;  %695 = vst [vmem:[#allocation5 + $0x100] sm:$0xff] %v567_v11  ;;  %v569_v21 = vadd.f32 0.1, %v441_v12  ;;  %v443_v22 = vmul.f32 0.5, %v885_v15  ;;  %906 = vtanh.f32 %v198_v3  ;;  %v213_v14 = vmul.f32 0.5, %v85_v0  ;;  %v88_v15 = vld [vmem:[#allocation2 + $0x208] sm:$0xff] }
  0x46   :  { %v889_v25 = vpop.eup %888  ;;  %696 = vst [vmem:[#allocation5 + $0x108] sm:$0xff] %v568_v16  ;;  %v570_v26 = vadd.f32 0.1, %v442_v17  ;;  %v444_v27 = vmul.f32 0.5, %v887_v20  ;;  %908 = vtanh.f32 %v199_v8  ;;  %v214_v19 = vmul.f32 0.5, %v86_v5  ;;  %v89_v20 = vld [vmem:[#allocation2 + $0x210] sm:$0xff] }
  0x47   :  { %v891_v30 = vpop.eup %890  ;;  %697 = vst [vmem:[#allocation5 + $0x110] sm:$0xff] %v569_v21  ;;  %v571_v31 = vadd.f32 0.1, %v443_v22  ;;  %v445_v32 = vmul.f32 0.5, %v889_v25  ;;  %910 = vtanh.f32 %v200_v13  ;;  %v215_v24 = vmul.f32 0.5, %v87_v10  ;;  %v90_v25 = vld [vmem:[#allocation2 + $0x218] sm:$0xff] }
  0x48   :  { %v893_v35 = vpop.eup %892  ;;  %698 = vst [vmem:[#allocation5 + $0x118] sm:$0xff] %v570_v26  ;;  %v572_v36 = vadd.f32 0.1, %v444_v27  ;;  %v446_v37 = vmul.f32 0.5, %v891_v30  ;;  %912 = vtanh.f32 %v201_v18  ;;  %v216_v29 = vmul.f32 0.5, %v88_v15  ;;  %v91_v30 = vld [vmem:[#allocation2 + $0x220] sm:$0xff] }
  0x49   :  { %v895_v40 = vpop.eup %894  ;;  %699 = vst [vmem:[#allocation5 + $0x120] sm:$0xff] %v571_v31  ;;  %v573_v41 = vadd.f32 0.1, %v445_v32  ;;  %v447_v42 = vmul.f32 0.5, %v893_v35  ;;  %914 = vtanh.f32 %v202_v23  ;;  %v217_v34 = vmul.f32 0.5, %v89_v20  ;;  %v92_v35 = vld [vmem:[#allocation2 + $0x228] sm:$0xff] }
  0x4a   :  { %v897_v45 = vpop.eup %896  ;;  %700 = vst [vmem:[#allocation5 + $0x128] sm:$0xff] %v572_v36  ;;  %v574_v46 = vadd.f32 0.1, %v446_v37  ;;  %v448_v47 = vmul.f32 0.5, %v895_v40  ;;  %916 = vtanh.f32 %v203_v28  ;;  %v218_v39 = vmul.f32 0.5, %v90_v25  ;;  %v93_v40 = vld [vmem:[#allocation2 + $0x230] sm:$0xff] }
  0x4b   :  { %v899_v50 = vpop.eup %898  ;;  %701 = vst [vmem:[#allocation5 + $0x130] sm:$0xff] %v573_v41  ;;  %v575_v51 = vadd.f32 0.1, %v447_v42  ;;  %v449_v52 = vmul.f32 0.5, %v897_v45  ;;  %918 = vtanh.f32 %v204_v33  ;;  %v219_v44 = vmul.f32 0.5, %v91_v30  ;;  %v94_v45 = vld [vmem:[#allocation2 + $0x238] sm:$0xff] }
  0x4c   :  { %v901_v55 = vpop.eup %900  ;;  %702 = vst [vmem:[#allocation5 + $0x138] sm:$0xff] %v574_v46  ;;  %v576_v56 = vadd.f32 0.1, %v448_v47  ;;  %v450_v57 = vmul.f32 0.5, %v899_v50  ;;  %920 = vtanh.f32 %v205_v38  ;;  %v220_v49 = vmul.f32 0.5, %v92_v35  ;;  %v95_v50 = vld [vmem:[#allocation2 + $0x240] sm:$0xff] }
  0x4d   :  { %v903_v60 = vpop.eup %902  ;;  %703 = vst [vmem:[#allocation5 + $0x140] sm:$0xff] %v575_v51  ;;  %v577_v61 = vadd.f32 0.1, %v449_v52  ;;  %v451_v62 = vmul.f32 0.5, %v901_v55  ;;  %922 = vtanh.f32 %v206_v43  ;;  %v221_v54 = vmul.f32 0.5, %v93_v40  ;;  %v96_v55 = vld [vmem:[#allocation2 + $0x248] sm:$0xff] }
  0x4e   :  { %v905_v1 = vpop.eup %904  ;;  %704 = vst [vmem:[#allocation5 + $0x148] sm:$0xff] %v576_v56  ;;  %v578_v2 = vadd.f32 0.1, %v450_v57  ;;  %v452_v3 = vmul.f32 0.5, %v903_v60  ;;  %924 = vtanh.f32 %v207_v48  ;;  %v222_v59 = vmul.f32 0.5, %v94_v45  ;;  %v97_v60 = vld [vmem:[#allocation2 + $0x250] sm:$0xff] }
  0x4f   :  { %v907_v6 = vpop.eup %906  ;;  %705 = vst [vmem:[#allocation5 + $0x150] sm:$0xff] %v577_v61  ;;  %v579_v7 = vadd.f32 0.1, %v451_v62  ;;  %v453_v8 = vmul.f32 0.5, %v905_v1  ;;  %926 = vtanh.f32 %v208_v53  ;;  %v223_v0 = vmul.f32 0.5, %v95_v50  ;;  %v98_v1 = vld [vmem:[#allocation2 + $0x258] sm:$0xff] }
  0x50   :  { %v909_v11 = vpop.eup %908  ;;  %706 = vst [vmem:[#allocation5 + $0x158] sm:$0xff] %v578_v2  ;;  %v580_v12 = vadd.f32 0.1, %v452_v3  ;;  %v454_v13 = vmul.f32 0.5, %v907_v6  ;;  %928 = vtanh.f32 %v209_v58  ;;  %v224_v5 = vmul.f32 0.5, %v96_v55  ;;  %v99_v6 = vld [vmem:[#allocation2 + $0x260] sm:$0xff] }
  0x51   :  { %v911_v16 = vpop.eup %910  ;;  %707 = vst [vmem:[#allocation5 + $0x160] sm:$0xff] %v579_v7  ;;  %v581_v17 = vadd.f32 0.1, %v453_v8  ;;  %v455_v18 = vmul.f32 0.5, %v909_v11  ;;  %930 = vtanh.f32 %v210_v63  ;;  %v225_v10 = vmul.f32 0.5, %v97_v60  ;;  %v100_v11 = vld [vmem:[#allocation2 + $0x268] sm:$0xff] }
  0x52   :  { %v913_v21 = vpop.eup %912  ;;  %708 = vst [vmem:[#allocation5 + $0x168] sm:$0xff] %v580_v12  ;;  %v582_v22 = vadd.f32 0.1, %v454_v13  ;;  %v456_v23 = vmul.f32 0.5, %v911_v16  ;;  %932 = vtanh.f32 %v211_v4  ;;  %v226_v15 = vmul.f32 0.5, %v98_v1  ;;  %v101_v16 = vld [vmem:[#allocation2 + $0x270] sm:$0xff] }
  0x53   :  { %v915_v26 = vpop.eup %914  ;;  %709 = vst [vmem:[#allocation5 + $0x170] sm:$0xff] %v581_v17  ;;  %v583_v27 = vadd.f32 0.1, %v455_v18  ;;  %v457_v28 = vmul.f32 0.5, %v913_v21  ;;  %934 = vtanh.f32 %v212_v9  ;;  %v227_v20 = vmul.f32 0.5, %v99_v6  ;;  %v102_v21 = vld [vmem:[#allocation2 + $0x278] sm:$0xff] }
  0x54   :  { %v917_v31 = vpop.eup %916  ;;  %710 = vst [vmem:[#allocation5 + $0x178] sm:$0xff] %v582_v22  ;;  %v584_v32 = vadd.f32 0.1, %v456_v23  ;;  %v458_v33 = vmul.f32 0.5, %v915_v26  ;;  %936 = vtanh.f32 %v213_v14  ;;  %v228_v25 = vmul.f32 0.5, %v100_v11  ;;  %v103_v26 = vld [vmem:[#allocation2 + $0x280] sm:$0xff] }
  0x55   :  { %v919_v36 = vpop.eup %918  ;;  %711 = vst [vmem:[#allocation5 + $0x180] sm:$0xff] %v583_v27  ;;  %v585_v37 = vadd.f32 0.1, %v457_v28  ;;  %v459_v38 = vmul.f32 0.5, %v917_v31  ;;  %938 = vtanh.f32 %v214_v19  ;;  %v229_v30 = vmul.f32 0.5, %v101_v16  ;;  %v104_v31 = vld [vmem:[#allocation2 + $0x288] sm:$0xff] }
  0x56   :  { %v921_v41 = vpop.eup %920  ;;  %712 = vst [vmem:[#allocation5 + $0x188] sm:$0xff] %v584_v32  ;;  %v586_v42 = vadd.f32 0.1, %v458_v33  ;;  %v460_v43 = vmul.f32 0.5, %v919_v36  ;;  %940 = vtanh.f32 %v215_v24  ;;  %v230_v35 = vmul.f32 0.5, %v102_v21  ;;  %v105_v36 = vld [vmem:[#allocation2 + $0x290] sm:$0xff] }
  0x57   :  { %v923_v46 = vpop.eup %922  ;;  %713 = vst [vmem:[#allocation5 + $0x190] sm:$0xff] %v585_v37  ;;  %v587_v47 = vadd.f32 0.1, %v459_v38  ;;  %v461_v48 = vmul.f32 0.5, %v921_v41  ;;  %942 = vtanh.f32 %v216_v29  ;;  %v231_v40 = vmul.f32 0.5, %v103_v26  ;;  %v106_v41 = vld [vmem:[#allocation2 + $0x298] sm:$0xff] }
  0x58   :  { %v925_v51 = vpop.eup %924  ;;  %714 = vst [vmem:[#allocation5 + $0x198] sm:$0xff] %v586_v42  ;;  %v588_v52 = vadd.f32 0.1, %v460_v43  ;;  %v462_v53 = vmul.f32 0.5, %v923_v46  ;;  %944 = vtanh.f32 %v217_v34  ;;  %v232_v45 = vmul.f32 0.5, %v104_v31  ;;  %v107_v46 = vld [vmem:[#allocation2 + $0x2a0] sm:$0xff] }
  0x59   :  { %v927_v56 = vpop.eup %926  ;;  %715 = vst [vmem:[#allocation5 + $0x1a0] sm:$0xff] %v587_v47  ;;  %v589_v57 = vadd.f32 0.1, %v461_v48  ;;  %v463_v58 = vmul.f32 0.5, %v925_v51  ;;  %946 = vtanh.f32 %v218_v39  ;;  %v233_v50 = vmul.f32 0.5, %v105_v36  ;;  %v108_v51 = vld [vmem:[#allocation2 + $0x2a8] sm:$0xff] }
  0x5a   :  { %v929_v61 = vpop.eup %928  ;;  %716 = vst [vmem:[#allocation5 + $0x1a8] sm:$0xff] %v588_v52  ;;  %v590_v62 = vadd.f32 0.1, %v462_v53  ;;  %v464_v63 = vmul.f32 0.5, %v927_v56  ;;  %948 = vtanh.f32 %v219_v44  ;;  %v234_v55 = vmul.f32 0.5, %v106_v41  ;;  %v109_v56 = vld [vmem:[#allocation2 + $0x2b0] sm:$0xff] }
  0x5b   :  { %v931_v2 = vpop.eup %930  ;;  %717 = vst [vmem:[#allocation5 + $0x1b0] sm:$0xff] %v589_v57  ;;  %v591_v3 = vadd.f32 0.1, %v463_v58  ;;  %v465_v4 = vmul.f32 0.5, %v929_v61  ;;  %950 = vtanh.f32 %v220_v49  ;;  %v235_v60 = vmul.f32 0.5, %v107_v46  ;;  %v110_v61 = vld [vmem:[#allocation2 + $0x2b8] sm:$0xff] }
  0x5c   :  { %v933_v7 = vpop.eup %932  ;;  %718 = vst [vmem:[#allocation5 + $0x1b8] sm:$0xff] %v590_v62  ;;  %v592_v8 = vadd.f32 0.1, %v464_v63  ;;  %v466_v9 = vmul.f32 0.5, %v931_v2  ;;  %952 = vtanh.f32 %v221_v54  ;;  %v236_v1 = vmul.f32 0.5, %v108_v51  ;;  %v111_v2 = vld [vmem:[#allocation2 + $0x2c0] sm:$0xff] }
  0x5d   :  { %v935_v12 = vpop.eup %934  ;;  %719 = vst [vmem:[#allocation5 + $0x1c0] sm:$0xff] %v591_v3  ;;  %v593_v13 = vadd.f32 0.1, %v465_v4  ;;  %v467_v14 = vmul.f32 0.5, %v933_v7  ;;  %954 = vtanh.f32 %v222_v59  ;;  %v237_v6 = vmul.f32 0.5, %v109_v56  ;;  %v112_v7 = vld [vmem:[#allocation2 + $0x2c8] sm:$0xff] }
  0x5e   :  { %v937_v17 = vpop.eup %936  ;;  %720 = vst [vmem:[#allocation5 + $0x1c8] sm:$0xff] %v592_v8  ;;  %v594_v18 = vadd.f32 0.1, %v466_v9  ;;  %v468_v19 = vmul.f32 0.5, %v935_v12  ;;  %956 = vtanh.f32 %v223_v0  ;;  %v238_v11 = vmul.f32 0.5, %v110_v61  ;;  %v113_v12 = vld [vmem:[#allocation2 + $0x2d0] sm:$0xff] }
  0x5f   :  { %v939_v22 = vpop.eup %938  ;;  %721 = vst [vmem:[#allocation5 + $0x1d0] sm:$0xff] %v593_v13  ;;  %v595_v23 = vadd.f32 0.1, %v467_v14  ;;  %v469_v24 = vmul.f32 0.5, %v937_v17  ;;  %958 = vtanh.f32 %v224_v5  ;;  %v239_v16 = vmul.f32 0.5, %v111_v2  ;;  %v114_v17 = vld [vmem:[#allocation2 + $0x2d8] sm:$0xff] }
  0x60   :  { %v941_v27 = vpop.eup %940  ;;  %722 = vst [vmem:[#allocation5 + $0x1d8] sm:$0xff] %v594_v18  ;;  %v596_v28 = vadd.f32 0.1, %v468_v19  ;;  %v470_v29 = vmul.f32 0.5, %v939_v22  ;;  %960 = vtanh.f32 %v225_v10  ;;  %v240_v21 = vmul.f32 0.5, %v112_v7  ;;  %v115_v22 = vld [vmem:[#allocation2 + $0x2e0] sm:$0xff] }
  0x61   :  { %v943_v32 = vpop.eup %942  ;;  %723 = vst [vmem:[#allocation5 + $0x1e0] sm:$0xff] %v595_v23  ;;  %v597_v33 = vadd.f32 0.1, %v469_v24  ;;  %v471_v34 = vmul.f32 0.5, %v941_v27  ;;  %962 = vtanh.f32 %v226_v15  ;;  %v241_v26 = vmul.f32 0.5, %v113_v12  ;;  %v116_v27 = vld [vmem:[#allocation2 + $0x2e8] sm:$0xff] }
  0x62   :  { %v945_v37 = vpop.eup %944  ;;  %724 = vst [vmem:[#allocation5 + $0x1e8] sm:$0xff] %v596_v28  ;;  %v598_v38 = vadd.f32 0.1, %v470_v29  ;;  %v472_v39 = vmul.f32 0.5, %v943_v32  ;;  %964 = vtanh.f32 %v227_v20  ;;  %v242_v31 = vmul.f32 0.5, %v114_v17  ;;  %v117_v32 = vld [vmem:[#allocation2 + $0x2f0] sm:$0xff] }
  0x63   :  { %v947_v42 = vpop.eup %946  ;;  %725 = vst [vmem:[#allocation5 + $0x1f0] sm:$0xff] %v597_v33  ;;  %v599_v43 = vadd.f32 0.1, %v471_v34  ;;  %v473_v44 = vmul.f32 0.5, %v945_v37  ;;  %966 = vtanh.f32 %v228_v25  ;;  %v243_v36 = vmul.f32 0.5, %v115_v22  ;;  %v118_v37 = vld [vmem:[#allocation2 + $0x2f8] sm:$0xff] }
  0x64   :  { %v949_v47 = vpop.eup %948  ;;  %726 = vst [vmem:[#allocation5 + $0x1f8] sm:$0xff] %v598_v38  ;;  %v600_v48 = vadd.f32 0.1, %v472_v39  ;;  %v474_v49 = vmul.f32 0.5, %v947_v42  ;;  %968 = vtanh.f32 %v229_v30  ;;  %v244_v41 = vmul.f32 0.5, %v116_v27  ;;  %v119_v42 = vld [vmem:[#allocation2 + $0x300] sm:$0xff] }
  0x65   :  { %v951_v52 = vpop.eup %950  ;;  %727 = vst [vmem:[#allocation5 + $0x200] sm:$0xff] %v599_v43  ;;  %v601_v53 = vadd.f32 0.1, %v473_v44  ;;  %v475_v54 = vmul.f32 0.5, %v949_v47  ;;  %970 = vtanh.f32 %v230_v35  ;;  %v245_v46 = vmul.f32 0.5, %v117_v32  ;;  %v120_v47 = vld [vmem:[#allocation2 + $0x308] sm:$0xff] }
  0x66   :  { %v953_v57 = vpop.eup %952  ;;  %728 = vst [vmem:[#allocation5 + $0x208] sm:$0xff] %v600_v48  ;;  %v602_v58 = vadd.f32 0.1, %v474_v49  ;;  %v476_v59 = vmul.f32 0.5, %v951_v52  ;;  %972 = vtanh.f32 %v231_v40  ;;  %v246_v51 = vmul.f32 0.5, %v118_v37  ;;  %v121_v52 = vld [vmem:[#allocation2 + $0x310] sm:$0xff] }
  0x67   :  { %v955_v62 = vpop.eup %954  ;;  %729 = vst [vmem:[#allocation5 + $0x210] sm:$0xff] %v601_v53  ;;  %v603_v63 = vadd.f32 0.1, %v475_v54  ;;  %v477_v0 = vmul.f32 0.5, %v953_v57  ;;  %974 = vtanh.f32 %v232_v45  ;;  %v247_v56 = vmul.f32 0.5, %v119_v42  ;;  %v122_v57 = vld [vmem:[#allocation2 + $0x318] sm:$0xff] }
  0x68   :  { %v957_v3 = vpop.eup %956  ;;  %730 = vst [vmem:[#allocation5 + $0x218] sm:$0xff] %v602_v58  ;;  %v604_v4 = vadd.f32 0.1, %v476_v59  ;;  %v478_v5 = vmul.f32 0.5, %v955_v62  ;;  %976 = vtanh.f32 %v233_v50  ;;  %v248_v61 = vmul.f32 0.5, %v120_v47  ;;  %v123_v62 = vld [vmem:[#allocation2 + $0x320] sm:$0xff] }
  0x69   :  { %v959_v8 = vpop.eup %958  ;;  %731 = vst [vmem:[#allocation5 + $0x220] sm:$0xff] %v603_v63  ;;  %v605_v9 = vadd.f32 0.1, %v477_v0  ;;  %v479_v10 = vmul.f32 0.5, %v957_v3  ;;  %978 = vtanh.f32 %v234_v55  ;;  %v249_v2 = vmul.f32 0.5, %v121_v52  ;;  %v124_v3 = vld [vmem:[#allocation2 + $0x328] sm:$0xff] }
  0x6a   :  { %v961_v13 = vpop.eup %960  ;;  %732 = vst [vmem:[#allocation5 + $0x228] sm:$0xff] %v604_v4  ;;  %v606_v14 = vadd.f32 0.1, %v478_v5  ;;  %v480_v15 = vmul.f32 0.5, %v959_v8  ;;  %980 = vtanh.f32 %v235_v60  ;;  %v250_v7 = vmul.f32 0.5, %v122_v57  ;;  %v125_v8 = vld [vmem:[#allocation2 + $0x330] sm:$0xff] }
  0x6b   :  { %v963_v18 = vpop.eup %962  ;;  %733 = vst [vmem:[#allocation5 + $0x230] sm:$0xff] %v605_v9  ;;  %v607_v19 = vadd.f32 0.1, %v479_v10  ;;  %v481_v20 = vmul.f32 0.5, %v961_v13  ;;  %982 = vtanh.f32 %v236_v1  ;;  %v251_v12 = vmul.f32 0.5, %v123_v62  ;;  %v126_v13 = vld [vmem:[#allocation2 + $0x338] sm:$0xff] }
  0x6c   :  { %v965_v23 = vpop.eup %964  ;;  %734 = vst [vmem:[#allocation5 + $0x238] sm:$0xff] %v606_v14  ;;  %v608_v24 = vadd.f32 0.1, %v480_v15  ;;  %v482_v25 = vmul.f32 0.5, %v963_v18  ;;  %984 = vtanh.f32 %v237_v6  ;;  %v252_v17 = vmul.f32 0.5, %v124_v3  ;;  %v127_v18 = vld [vmem:[#allocation2 + $0x340] sm:$0xff] }
  0x6d   :  { %v967_v28 = vpop.eup %966  ;;  %735 = vst [vmem:[#allocation5 + $0x240] sm:$0xff] %v607_v19  ;;  %v609_v29 = vadd.f32 0.1, %v481_v20  ;;  %v483_v30 = vmul.f32 0.5, %v965_v23  ;;  %986 = vtanh.f32 %v238_v11  ;;  %v253_v22 = vmul.f32 0.5, %v125_v8  ;;  %v128_v23 = vld [vmem:[#allocation2 + $0x348] sm:$0xff] }
  0x6e   :  { %v969_v33 = vpop.eup %968  ;;  %736 = vst [vmem:[#allocation5 + $0x248] sm:$0xff] %v608_v24  ;;  %v610_v34 = vadd.f32 0.1, %v482_v25  ;;  %v484_v35 = vmul.f32 0.5, %v967_v28  ;;  %988 = vtanh.f32 %v239_v16  ;;  %v254_v27 = vmul.f32 0.5, %v126_v13  ;;  %v129_v28 = vld [vmem:[#allocation2 + $0x350] sm:$0xff] }
  0x6f   :  { %v971_v38 = vpop.eup %970  ;;  %737 = vst [vmem:[#allocation5 + $0x250] sm:$0xff] %v609_v29  ;;  %v611_v39 = vadd.f32 0.1, %v483_v30  ;;  %v485_v40 = vmul.f32 0.5, %v969_v33  ;;  %990 = vtanh.f32 %v240_v21  ;;  %v255_v32 = vmul.f32 0.5, %v127_v18  ;;  %v130_v33 = vld [vmem:[#allocation2 + $0x358] sm:$0xff] }
  0x70   :  { %v973_v43 = vpop.eup %972  ;;  %738 = vst [vmem:[#allocation5 + $0x258] sm:$0xff] %v610_v34  ;;  %v612_v44 = vadd.f32 0.1, %v484_v35  ;;  %v486_v45 = vmul.f32 0.5, %v971_v38  ;;  %992 = vtanh.f32 %v241_v26  ;;  %v256_v37 = vmul.f32 0.5, %v128_v23  ;;  %v131_v38 = vld [vmem:[#allocation2 + $0x360] sm:$0xff] }
  0x71   :  { %v975_v48 = vpop.eup %974  ;;  %739 = vst [vmem:[#allocation5 + $0x260] sm:$0xff] %v611_v39  ;;  %v613_v49 = vadd.f32 0.1, %v485_v40  ;;  %v487_v50 = vmul.f32 0.5, %v973_v43  ;;  %994 = vtanh.f32 %v242_v31  ;;  %v257_v42 = vmul.f32 0.5, %v129_v28  ;;  %v132_v43 = vld [vmem:[#allocation2 + $0x368] sm:$0xff] }
  0x72   :  { %v977_v53 = vpop.eup %976  ;;  %740 = vst [vmem:[#allocation5 + $0x268] sm:$0xff] %v612_v44  ;;  %v614_v54 = vadd.f32 0.1, %v486_v45  ;;  %v488_v55 = vmul.f32 0.5, %v975_v48  ;;  %996 = vtanh.f32 %v243_v36  ;;  %v258_v47 = vmul.f32 0.5, %v130_v33  ;;  %v133_v48 = vld [vmem:[#allocation2 + $0x370] sm:$0xff] }
  0x73   :  { %v979_v58 = vpop.eup %978  ;;  %741 = vst [vmem:[#allocation5 + $0x270] sm:$0xff] %v613_v49  ;;  %v615_v59 = vadd.f32 0.1, %v487_v50  ;;  %v489_v60 = vmul.f32 0.5, %v977_v53  ;;  %998 = vtanh.f32 %v244_v41  ;;  %v259_v52 = vmul.f32 0.5, %v131_v38  ;;  %v134_v53 = vld [vmem:[#allocation2 + $0x378] sm:$0xff] }
  0x74   :  { %v981_v63 = vpop.eup %980  ;;  %742 = vst [vmem:[#allocation5 + $0x278] sm:$0xff] %v614_v54  ;;  %v616_v0 = vadd.f32 0.1, %v488_v55  ;;  %v490_v1 = vmul.f32 0.5, %v979_v58  ;;  %1000 = vtanh.f32 %v245_v46  ;;  %v260_v57 = vmul.f32 0.5, %v132_v43  ;;  %v135_v58 = vld [vmem:[#allocation2 + $0x380] sm:$0xff] }
  0x75   :  { %v983_v4 = vpop.eup %982  ;;  %743 = vst [vmem:[#allocation5 + $0x280] sm:$0xff] %v615_v59  ;;  %v617_v5 = vadd.f32 0.1, %v489_v60  ;;  %v491_v6 = vmul.f32 0.5, %v981_v63  ;;  %1002 = vtanh.f32 %v246_v51  ;;  %v261_v62 = vmul.f32 0.5, %v133_v48  ;;  %v136_v63 = vld [vmem:[#allocation2 + $0x388] sm:$0xff] }
  0x76   :  { %v985_v9 = vpop.eup %984  ;;  %744 = vst [vmem:[#allocation5 + $0x288] sm:$0xff] %v616_v0  ;;  %v618_v10 = vadd.f32 0.1, %v490_v1  ;;  %v492_v11 = vmul.f32 0.5, %v983_v4  ;;  %1004 = vtanh.f32 %v247_v56  ;;  %v262_v3 = vmul.f32 0.5, %v134_v53  ;;  %v137_v4 = vld [vmem:[#allocation2 + $0x390] sm:$0xff] }
  0x77   :  { %v987_v14 = vpop.eup %986  ;;  %745 = vst [vmem:[#allocation5 + $0x290] sm:$0xff] %v617_v5  ;;  %v619_v15 = vadd.f32 0.1, %v491_v6  ;;  %v493_v16 = vmul.f32 0.5, %v985_v9  ;;  %1006 = vtanh.f32 %v248_v61  ;;  %v263_v8 = vmul.f32 0.5, %v135_v58  ;;  %v138_v9 = vld [vmem:[#allocation2 + $0x398] sm:$0xff] }
  0x78   :  { %v989_v19 = vpop.eup %988  ;;  %746 = vst [vmem:[#allocation5 + $0x298] sm:$0xff] %v618_v10  ;;  %v620_v20 = vadd.f32 0.1, %v492_v11  ;;  %v494_v21 = vmul.f32 0.5, %v987_v14  ;;  %1008 = vtanh.f32 %v249_v2  ;;  %v264_v13 = vmul.f32 0.5, %v136_v63  ;;  %v139_v14 = vld [vmem:[#allocation2 + $0x3a0] sm:$0xff] }
  0x79   :  { %v991_v24 = vpop.eup %990  ;;  %747 = vst [vmem:[#allocation5 + $0x2a0] sm:$0xff] %v619_v15  ;;  %v621_v25 = vadd.f32 0.1, %v493_v16  ;;  %v495_v26 = vmul.f32 0.5, %v989_v19  ;;  %1010 = vtanh.f32 %v250_v7  ;;  %v265_v18 = vmul.f32 0.5, %v137_v4  ;;  %v140_v19 = vld [vmem:[#allocation2 + $0x3a8] sm:$0xff] }
  0x7a   :  { %v993_v29 = vpop.eup %992  ;;  %748 = vst [vmem:[#allocation5 + $0x2a8] sm:$0xff] %v620_v20  ;;  %v622_v30 = vadd.f32 0.1, %v494_v21  ;;  %v496_v31 = vmul.f32 0.5, %v991_v24  ;;  %1012 = vtanh.f32 %v251_v12  ;;  %v266_v23 = vmul.f32 0.5, %v138_v9  ;;  %v141_v24 = vld [vmem:[#allocation2 + $0x3b0] sm:$0xff] }
  0x7b   :  { %v995_v34 = vpop.eup %994  ;;  %749 = vst [vmem:[#allocation5 + $0x2b0] sm:$0xff] %v621_v25  ;;  %v623_v35 = vadd.f32 0.1, %v495_v26  ;;  %v497_v36 = vmul.f32 0.5, %v993_v29  ;;  %1014 = vtanh.f32 %v252_v17  ;;  %v267_v28 = vmul.f32 0.5, %v139_v14  ;;  %v142_v29 = vld [vmem:[#allocation2 + $0x3b8] sm:$0xff] }
  0x7c   :  { %v997_v39 = vpop.eup %996  ;;  %750 = vst [vmem:[#allocation5 + $0x2b8] sm:$0xff] %v622_v30  ;;  %v624_v40 = vadd.f32 0.1, %v496_v31  ;;  %v498_v41 = vmul.f32 0.5, %v995_v34  ;;  %1016 = vtanh.f32 %v253_v22  ;;  %v268_v33 = vmul.f32 0.5, %v140_v19  ;;  %v143_v34 = vld [vmem:[#allocation2 + $0x3c0] sm:$0xff] }
  0x7d   :  { %v999_v44 = vpop.eup %998  ;;  %751 = vst [vmem:[#allocation5 + $0x2c0] sm:$0xff] %v623_v35  ;;  %v625_v45 = vadd.f32 0.1, %v497_v36  ;;  %v499_v46 = vmul.f32 0.5, %v997_v39  ;;  %1018 = vtanh.f32 %v254_v27  ;;  %v269_v38 = vmul.f32 0.5, %v141_v24  ;;  %v144_v39 = vld [vmem:[#allocation2 + $0x3c8] sm:$0xff] }
  0x7e   :  { %v1001_v49 = vpop.eup %1000  ;;  %752 = vst [vmem:[#allocation5 + $0x2c8] sm:$0xff] %v624_v40  ;;  %v626_v50 = vadd.f32 0.1, %v498_v41  ;;  %v500_v51 = vmul.f32 0.5, %v999_v44  ;;  %1020 = vtanh.f32 %v255_v32  ;;  %v270_v43 = vmul.f32 0.5, %v142_v29  ;;  %v145_v44 = vld [vmem:[#allocation2 + $0x3d0] sm:$0xff] }
  0x7f   :  { %v1003_v54 = vpop.eup %1002  ;;  %753 = vst [vmem:[#allocation5 + $0x2d0] sm:$0xff] %v625_v45  ;;  %v627_v55 = vadd.f32 0.1, %v499_v46  ;;  %v501_v56 = vmul.f32 0.5, %v1001_v49  ;;  %1022 = vtanh.f32 %v256_v37  ;;  %v271_v48 = vmul.f32 0.5, %v143_v34  ;;  %v146_v49 = vld [vmem:[#allocation2 + $0x3d8] sm:$0xff] }
  0x80   :  { %v1005_v59 = vpop.eup %1004  ;;  %754 = vst [vmem:[#allocation5 + $0x2d8] sm:$0xff] %v626_v50  ;;  %v628_v60 = vadd.f32 0.1, %v500_v51  ;;  %v502_v61 = vmul.f32 0.5, %v1003_v54  ;;  %1024 = vtanh.f32 %v257_v42  ;;  %v272_v53 = vmul.f32 0.5, %v144_v39  ;;  %v147_v54 = vld [vmem:[#allocation2 + $0x3e0] sm:$0xff] }
  0x81   :  { %v1007_v0 = vpop.eup %1006  ;;  %755 = vst [vmem:[#allocation5 + $0x2e0] sm:$0xff] %v627_v55  ;;  %v629_v1 = vadd.f32 0.1, %v501_v56  ;;  %v503_v2 = vmul.f32 0.5, %v1005_v59  ;;  %1026 = vtanh.f32 %v258_v47  ;;  %v273_v58 = vmul.f32 0.5, %v145_v44  ;;  %v148_v59 = vld [vmem:[#allocation2 + $0x3e8] sm:$0xff] }
  0x82   :  { %v1009_v5 = vpop.eup %1008  ;;  %756 = vst [vmem:[#allocation5 + $0x2e8] sm:$0xff] %v628_v60  ;;  %v630_v6 = vadd.f32 0.1, %v502_v61  ;;  %v504_v7 = vmul.f32 0.5, %v1007_v0  ;;  %1028 = vtanh.f32 %v259_v52  ;;  %v274_v63 = vmul.f32 0.5, %v146_v49  ;;  %v149_v0 = vld [vmem:[#allocation2 + $0x3f0] sm:$0xff] }
  0x83   :  { %v1011_v10 = vpop.eup %1010  ;;  %757 = vst [vmem:[#allocation5 + $0x2f0] sm:$0xff] %v629_v1  ;;  %v631_v11 = vadd.f32 0.1, %v503_v2  ;;  %v505_v12 = vmul.f32 0.5, %v1009_v5  ;;  %1030 = vtanh.f32 %v260_v57  ;;  %v275_v4 = vmul.f32 0.5, %v147_v54  ;;  %v150_v5 = vld [vmem:[#allocation2 + $0x3f8] sm:$0xff] }
  0x84   :  { %v1013_v15 = vpop.eup %1012  ;;  %758 = vst [vmem:[#allocation5 + $0x2f8] sm:$0xff] %v630_v6  ;;  %v632_v16 = vadd.f32 0.1, %v504_v7  ;;  %v506_v17 = vmul.f32 0.5, %v1011_v10  ;;  %1032 = vtanh.f32 %v261_v62  ;;  %v276_v9 = vmul.f32 0.5, %v148_v59 }
  0x85   :  { %v1015_v20 = vpop.eup %1014  ;;  %759 = vst [vmem:[#allocation5 + $0x300] sm:$0xff] %v631_v11  ;;  %v633_v21 = vadd.f32 0.1, %v505_v12  ;;  %v507_v22 = vmul.f32 0.5, %v1013_v15  ;;  %1034 = vtanh.f32 %v262_v3 }
  0x86   :  { %v1017_v25 = vpop.eup %1016  ;;  %760 = vst [vmem:[#allocation5 + $0x308] sm:$0xff] %v632_v16  ;;  %v634_v26 = vadd.f32 0.1, %v506_v17  ;;  %v508_v27 = vmul.f32 0.5, %v1015_v20  ;;  %1036 = vtanh.f32 %v263_v8  ;;  %v278_v17 = vmul.f32 0.5, %v150_v5 }
  0x87   :  { %v1019_v30 = vpop.eup %1018  ;;  %761 = vst [vmem:[#allocation5 + $0x310] sm:$0xff] %v633_v21  ;;  %v635_v31 = vadd.f32 0.1, %v507_v22  ;;  %v509_v32 = vmul.f32 0.5, %v1017_v25  ;;  %1038 = vtanh.f32 %v264_v13  ;;  %v277_v13 = vmul.f32 0.5, %v149_v0 }
  0x88   :  { %v1021_v35 = vpop.eup %1020  ;;  %762 = vst [vmem:[#allocation5 + $0x318] sm:$0xff] %v634_v26  ;;  %v636_v36 = vadd.f32 0.1, %v508_v27  ;;  %v510_v37 = vmul.f32 0.5, %v1019_v30  ;;  %1040 = vtanh.f32 %v265_v18 }
  0x89   :  { %v1023_v40 = vpop.eup %1022  ;;  %763 = vst [vmem:[#allocation5 + $0x320] sm:$0xff] %v635_v31  ;;  %v637_v41 = vadd.f32 0.1, %v509_v32  ;;  %v511_v42 = vmul.f32 0.5, %v1021_v35  ;;  %1042 = vtanh.f32 %v266_v23 }
  0x8a   :  { %v1025_v45 = vpop.eup %1024  ;;  %764 = vst [vmem:[#allocation5 + $0x328] sm:$0xff] %v636_v36  ;;  %v638_v46 = vadd.f32 0.1, %v510_v37  ;;  %v512_v47 = vmul.f32 0.5, %v1023_v40  ;;  %1044 = vtanh.f32 %v267_v28 }
  0x8b   :  { %v1027_v50 = vpop.eup %1026  ;;  %765 = vst [vmem:[#allocation5 + $0x330] sm:$0xff] %v637_v41  ;;  %v639_v51 = vadd.f32 0.1, %v511_v42  ;;  %v513_v52 = vmul.f32 0.5, %v1025_v45  ;;  %1046 = vtanh.f32 %v268_v33 }
  0x8c   :  { %v1029_v55 = vpop.eup %1028  ;;  %766 = vst [vmem:[#allocation5 + $0x338] sm:$0xff] %v638_v46  ;;  %v640_v56 = vadd.f32 0.1, %v512_v47  ;;  %v514_v57 = vmul.f32 0.5, %v1027_v50  ;;  %1048 = vtanh.f32 %v269_v38 }
  0x8d   :  { %v1031_v60 = vpop.eup %1030  ;;  %767 = vst [vmem:[#allocation5 + $0x340] sm:$0xff] %v639_v51  ;;  %v641_v61 = vadd.f32 0.1, %v513_v52  ;;  %v515_v62 = vmul.f32 0.5, %v1029_v55  ;;  %1050 = vtanh.f32 %v270_v43 }
  0x8e   :  { %v1033_v1 = vpop.eup %1032  ;;  %768 = vst [vmem:[#allocation5 + $0x348] sm:$0xff] %v640_v56  ;;  %v642_v2 = vadd.f32 0.1, %v514_v57  ;;  %v516_v3 = vmul.f32 0.5, %v1031_v60  ;;  %1052 = vtanh.f32 %v271_v48 }
  0x8f   :  { %v1035_v6 = vpop.eup %1034  ;;  %769 = vst [vmem:[#allocation5 + $0x350] sm:$0xff] %v641_v61  ;;  %v643_v7 = vadd.f32 0.1, %v515_v62  ;;  %v517_v8 = vmul.f32 0.5, %v1033_v1  ;;  %1054 = vtanh.f32 %v272_v53 }
  0x90   :  { %v1037_v10 = vpop.eup %1036  ;;  %770 = vst [vmem:[#allocation5 + $0x358] sm:$0xff] %v642_v2  ;;  %v644_v11 = vadd.f32 0.1, %v516_v3  ;;  %v518_v12 = vmul.f32 0.5, %v1035_v6  ;;  %1056 = vtanh.f32 %v273_v58 }
  0x91   :  { %v1039_v14 = vpop.eup %1038  ;;  %771 = vst [vmem:[#allocation5 + $0x360] sm:$0xff] %v643_v7  ;;  %v645_v15 = vadd.f32 0.1, %v517_v8  ;;  %v519_v16 = vmul.f32 0.5, %v1037_v10  ;;  %1058 = vtanh.f32 %v274_v63 }
  0x92   :  { %v1041_v18 = vpop.eup %1040  ;;  %772 = vst [vmem:[#allocation5 + $0x368] sm:$0xff] %v644_v11  ;;  %v646_v19 = vadd.f32 0.1, %v518_v12  ;;  %v520_v20 = vmul.f32 0.5, %v1039_v14  ;;  %1060 = vtanh.f32 %v275_v4 }
  0x93   :  { %v1043_v21 = vpop.eup %1042  ;;  %773 = vst [vmem:[#allocation5 + $0x370] sm:$0xff] %v645_v15  ;;  %v647_v22 = vadd.f32 0.1, %v519_v16  ;;  %v521_v23 = vmul.f32 0.5, %v1041_v18  ;;  %1062 = vtanh.f32 %v276_v9 }
  0x94   :  { %v1045_v24 = vpop.eup %1044  ;;  %774 = vst [vmem:[#allocation5 + $0x378] sm:$0xff] %v646_v19  ;;  %v648_v25 = vadd.f32 0.1, %v520_v20  ;;  %v522_v26 = vmul.f32 0.5, %v1043_v21  ;;  %1064 = vtanh.f32 %v277_v13 }
  0x95   :  { %v1047_v27 = vpop.eup %1046  ;;  %775 = vst [vmem:[#allocation5 + $0x380] sm:$0xff] %v647_v22  ;;  %v649_v28 = vadd.f32 0.1, %v521_v23  ;;  %v523_v29 = vmul.f32 0.5, %v1045_v24  ;;  %1066 = vtanh.f32 %v278_v17 }
  0x96   :  { %v1049_v30 = vpop.eup %1048  ;;  %776 = vst [vmem:[#allocation5 + $0x388] sm:$0xff] %v648_v25  ;;  %v650_v31 = vadd.f32 0.1, %v522_v26  ;;  %v524_v32 = vmul.f32 0.5, %v1047_v27 }
  0x97   :  { %v1051_v33 = vpop.eup %1050  ;;  %777 = vst [vmem:[#allocation5 + $0x390] sm:$0xff] %v649_v28  ;;  %v651_v34 = vadd.f32 0.1, %v523_v29  ;;  %v525_v35 = vmul.f32 0.5, %v1049_v30 }
  0x98   :  { %v1053_v36 = vpop.eup %1052  ;;  %778 = vst [vmem:[#allocation5 + $0x398] sm:$0xff] %v650_v31  ;;  %v652_v37 = vadd.f32 0.1, %v524_v32  ;;  %v526_v38 = vmul.f32 0.5, %v1051_v33 }
  0x99   :  { %v1055_v39 = vpop.eup %1054  ;;  %779 = vst [vmem:[#allocation5 + $0x3a0] sm:$0xff] %v651_v34  ;;  %v653_v40 = vadd.f32 0.1, %v525_v35  ;;  %v527_v41 = vmul.f32 0.5, %v1053_v36 }
  0x9a   :  { %v1057_v42 = vpop.eup %1056  ;;  %780 = vst [vmem:[#allocation5 + $0x3a8] sm:$0xff] %v652_v37  ;;  %v654_v43 = vadd.f32 0.1, %v526_v38  ;;  %v528_v44 = vmul.f32 0.5, %v1055_v39 }
  0x9b   :  { %v1059_v45 = vpop.eup %1058  ;;  %781 = vst [vmem:[#allocation5 + $0x3b0] sm:$0xff] %v653_v40  ;;  %v655_v46 = vadd.f32 0.1, %v527_v41  ;;  %v529_v47 = vmul.f32 0.5, %v1057_v42 }
  0x9c   :  { %v1061_v48 = vpop.eup %1060  ;;  %782 = vst [vmem:[#allocation5 + $0x3b8] sm:$0xff] %v654_v43  ;;  %v656_v49 = vadd.f32 0.1, %v528_v44  ;;  %v530_v50 = vmul.f32 0.5, %v1059_v45 }
  0x9d   :  { %v1063_v51 = vpop.eup %1062  ;;  %783 = vst [vmem:[#allocation5 + $0x3c0] sm:$0xff] %v655_v46  ;;  %v657_v52 = vadd.f32 0.1, %v529_v47  ;;  %v531_v53 = vmul.f32 0.5, %v1061_v48 }
  0x9e   :  { %v1065_v54 = vpop.eup %1064  ;;  %784 = vst [vmem:[#allocation5 + $0x3c8] sm:$0xff] %v656_v49  ;;  %v658_v55 = vadd.f32 0.1, %v530_v50  ;;  %v532_v56 = vmul.f32 0.5, %v1063_v51 }
  0x9f   :  { %v1067_v57 = vpop.eup %1066  ;;  %785 = vst [vmem:[#allocation5 + $0x3d0] sm:$0xff] %v657_v52  ;;  %v659_v58 = vadd.f32 0.1, %v531_v53  ;;  %v533_v59 = vmul.f32 0.5, %v1065_v54 }
  0xa0   :  { %786 = vst [vmem:[#allocation5 + $0x3d8] sm:$0xff] %v658_v55  ;;  %v660_v60 = vadd.f32 0.1, %v532_v56  ;;  %v534_v61 = vmul.f32 0.5, %v1067_v57 }
  0xa1   :  { %787 = vst [vmem:[#allocation5 + $0x3e0] sm:$0xff] %v659_v58  ;;  %v661_v62 = vadd.f32 0.1, %v533_v59 }
  0xa2   :  { %788 = vst [vmem:[#allocation5 + $0x3e8] sm:$0xff] %v660_v60  ;;  %v662_v63 = vadd.f32 0.1, %v534_v61 }
  0xa3   :  { %789 = vst [vmem:[#allocation5 + $0x3f0] sm:$0xff] %v661_v62 }
  0xa4   :  { %790 = vst [vmem:[#allocation5 + $0x3f8] sm:$0xff] %v662_v63 }
  0xa5   :  { %1101 = shalt.err (!%p1098_p12)
}
  0xa6   :  { %s1102_s24 = scalar_lea.hbm %s1161_s1, 16384 }
  0xa7   :  { %p1103_p13 = scmp.ne.s32.totalorder %s1161_s1, %s1102_s24  ;;  %p1106_p0 = scmp.lt.u32.totalorder %s1102_s24, %s1161_s1 }
  0xa9   :  { %p1108_p1 = pnand %p1106_p0, %p1103_p13 }
  0xab   :  { %1111 = shalt.err (!%p1108_p1)
}
  0xac   :  { %802 = dma.vmem_to_hbm [thread:$0]  %s797_s20, 16384, %s1161_s1, [#allocation4], %s1117_s16, %s1117_s16, %s1118_s17  }
  0xad   :  { %1114 = dma.done.wait [#allocation4], 16384  }
  0xae   :  { %1115 = vsyncadd [#allocation4], 4294950912 }
  0xaf   :  { %806 = vsyncpa [#allocation3], 1 }
  0xb0   :  { %807 = vsyncpa [#allocation4], 1 }

</bundles_post_ra>
